<compile_context>
chip_gen: v7x
topology: tpu7x:2x2x1
jax: 0.10.0
libtpu: 0.0.40
codegen_flags: <defaults>
</compile_context>

<pallas_src>
import jax
import jax.numpy as jnp
from jax.experimental import pallas as pl
from jax.experimental.pallas import tpu as pltpu

_NEG_BIG = -1e30          # plain Python float -> jaxpr literal (no captured const)
_MAX_TILE_N = 256         # rows per batch tile (sublane-aligned)
_MAX_TILE_C = 4096        # classes per class tile (lane-aligned); 256x4096 f32 = 4 MiB


def _round_up(x, m):
    return ((x + m - 1) // m) * m


def _choose_tiles(n, c):
    # Row tiles: multiple of 8 (or the full dim if n <= 8).  For small/medium
    # N, shrink the tile so there are >= 2 batch tiles (megacore occupancy).
    if n <= 8:
        tile_n = n
    else:
        tile_n = min(_MAX_TILE_N, _round_up((n + 1) // 2, 8))
    grid_n = pl.cdiv(n, tile_n)

    # Class tiles: one full-width tile if C fits, else lane-dense 4096-wide
    # tiles with an (in-kernel-masked) ragged last tile.  No logits padding.
    tile_c = c if c <= _MAX_TILE_C else _MAX_TILE_C
    grid_c = pl.cdiv(c, tile_c)
    return tile_n, grid_n, tile_c, grid_c


def _make_ce_kernel(n_total, c_total, tile_n, tile_c,
                    needs_lane_mask, needs_row_mask):
    def kernel(logits_ref, labels_ref, out_ref, m_sc, l_sc, p_sc):
        i = pl.program_id(0)            # batch tile (parallel)
        j = pl.program_id(1)            # class tile (innermost reduction)

        @pl.when(j == 0)
        def _init():
            m_sc[...] = jnp.full_like(m_sc, _NEG_BIG)
            l_sc[...] = jnp.zeros_like(l_sc)
            p_sc[...] = jnp.zeros_like(p_sc)

        # Native-dtype DMA; math in f32.
        x = logits_ref[...].astype(jnp.float32)          # (tile_n, tile_c)
        lbl = labels_ref[...]                            # (tile_n, 1) int32

        # Relative (within-tile) class ids; compare against relative bounds /
        # labels instead of adding j*tile_c to the whole tile.
        col = jax.lax.broadcasted_iota(jnp.int32, (tile_n, tile_c), 1)
        j_off = j * tile_c

        if needs_lane_mask:
            # Only compiled in when C % tile_c != 0: lanes past C (garbage
            # from the ragged last tile) are pushed to -inf-ish.
            x_m = jnp.where(col < (c_total - j_off), x, _NEG_BIG)
        else:
            x_m = x

        # Online log-sum-exp update (flash-attention-style running max/sum).
        m_new = jnp.maximum(m_sc[...], jnp.max(x_m, axis=-1, keepdims=True))
        alpha = jnp.exp(m_sc[...] - m_new)
        e = jnp.exp(x_m - m_new)                         # masked lanes -> 0
        l_sc[...] = alpha * l_sc[...] + jnp.sum(e, axis=-1, keepdims=True)

        # Gather the logit at the label index via a one-hot compare mask.
        p_sc[...] = p_sc[...] + jnp.sum(
            jnp.where(col == (lbl - j_off), x_m, 0.0), axis=-1, keepdims=True)

        m_sc[...] = m_new

        @pl.when(j == pl.num_programs(1) - 1)
        def _finalize():
            lse = m_sc[...] + jnp.log(l_sc[...])         # (tile_n, 1)
            nll = lse - p_sc[...]                        # (tile_n, 1)
            if needs_row_mask:
                row = (jax.lax.broadcasted_iota(jnp.int32, (tile_n, 1), 0)
                       + i * tile_n)
                nll = jnp.where(row < n_total, nll, 0.0)  # drop padded rows
            tile_sum = jnp.sum(nll, axis=0, keepdims=True)         # (1, 1)
            out_ref[...] = jnp.broadcast_to(
                tile_sum.reshape(1, 1, 1), (1, 1, 128))  # lane-dense block

    return kernel


@jax.jit
def cross_entropy_loss(output, label):
    """Pallas equivalent of F.cross_entropy(output, label) (mean reduction).

    output: (N, C) float array of raw logits (any float dtype).
    label:  (N,)   integer class indices in [0, C).
    """
    n, c = output.shape
    tile_n, grid_n, tile_c, grid_c = _choose_tiles(n, c)

    needs_lane_mask = (grid_c * tile_c != c)   # ragged last class tile
    needs_row_mask = (grid_n * tile_n != n)    # ragged last batch tile

    # Only the tiny labels vector is padded (logits go to the kernel as-is).
    labels = label.astype(jnp.int32).reshape(n, 1)
    n_round = grid_n * tile_n
    if n_round != n:
        labels = jnp.pad(labels, ((0, n_round - n), (0, 0)))

    kernel = _make_ce_kernel(n, c, tile_n, tile_c,
                             needs_lane_mask, needs_row_mask)

    itemsize = jnp.dtype(output.dtype).itemsize
    cost = pl.CostEstimate(
        flops=6 * n * c,
        transcendentals=n * c,
        bytes_accessed=n * c * itemsize + n * 4 + grid_n * 128 * 4,
    )

    partials = pl.pallas_call(
        kernel,
        out_shape=jax.ShapeDtypeStruct((grid_n, 1, 128), jnp.float32),
        grid=(grid_n, grid_c),
        in_specs=[
            pl.BlockSpec((tile_n, tile_c), lambda i, j: (i, j)),
            pl.BlockSpec((tile_n, 1), lambda i, j: (i, 0)),
        ],
        out_specs=pl.BlockSpec((1, 1, 128), lambda i, j: (i, 0, 0)),
        scratch_shapes=[
            pltpu.VMEM((tile_n, 1), jnp.float32),   # running max
            pltpu.VMEM((tile_n, 1), jnp.float32),   # running sum-exp
            pltpu.VMEM((tile_n, 1), jnp.float32),   # running picked logit
        ],
        compiler_params=pltpu.CompilerParams(
            dimension_semantics=("parallel", "arbitrary"),
            vmem_limit_bytes=48 * 1024 * 1024,
        ),
        cost_estimate=cost,
    )(output, labels)

    # Tiny final reduction of per-batch-tile partial sums; divide by the
    # TOTAL batch size exactly once.
    return jnp.sum(partials[:, 0, 0]) * (1.0 / n)


def _reference(output, label):
    logp = jax.nn.log_softmax(output.astype(jnp.float32), axis=-1)
    return -jnp.mean(jnp.take_along_axis(logp, label[:, None], axis=-1))


if __name__ == "__main__":
    key = jax.random.PRNGKey(0)
    k1, k2, k3, k4, k5, k6 = jax.random.split(key, 6)

    # Small case matching the module's toy shapes (single tile).
    N, C = 8, 32
    output = jax.random.normal(k1, (N, C), dtype=jnp.float32)
    label = jax.random.randint(k2, (N,), 0, C, dtype=jnp.int32)
    loss = cross_entropy_loss(output, label)
    jax.block_until_ready(loss)
    ref = _reference(output, label)
    assert jnp.allclose(loss, ref, atol=1e-4, rtol=1e-4), (loss, ref)

    # Two batch tiles + ragged last row tile, single full-width class tile.
    N2, C2 = 200, 2100
    output2 = jax.random.normal(k3, (N2, C2), dtype=jnp.float32)
    label2 = jax.random.randint(k4, (N2,), 0, C2, dtype=jnp.int32)
    loss2 = cross_entropy_loss(output2, label2)
    jax.block_until_ready(loss2)
    ref2 = _reference(output2, label2)
    assert jnp.allclose(loss2, ref2, atol=1e-4, rtol=1e-4), (loss2, ref2)

    # Multi class-tile online-LSE path with ragged last class AND row tiles.
    N3, C3 = 24, 5000
    output3 = jax.random.normal(k5, (N3, C3), dtype=jnp.float32)
    label3 = jax.random.randint(k6, (N3,), 0, C3, dtype=jnp.int32)
    loss3 = cross_entropy_loss(output3, label3)
    jax.block_until_ready(loss3)
    ref3 = _reference(output3, label3)
    assert jnp.allclose(loss3, ref3, atol=1e-4, rtol=1e-4), (loss3, ref3)

    print("KERNEL_OK")
</pallas_src>

<mosaic_0001>
module attributes {stable_mosaic.version = 11 : i64} {
  func.func @kernel(%arg0: i32, %arg1: i32, %arg2: memref<8x32xf32, #tpu.memory_space<vmem>>, %arg3: memref<8x1xi32, #tpu.memory_space<vmem>>, %arg4: memref<1x1x128xf32, #tpu.memory_space<vmem>>, %arg5: memref<8x1xf32, #tpu.memory_space<vmem>>, %arg6: memref<8x1xf32, #tpu.memory_space<vmem>>, %arg7: memref<8x1xf32, #tpu.memory_space<vmem>>) attributes {dimension_semantics = [#tpu.dimension_semantics<parallel>, #tpu.dimension_semantics<arbitrary>], iteration_bounds = array<i64: 1, 1>, scalar_prefetch = 0 : i64, scratch_operands = 3 : i64, tpu.core_type = #tpu.core_type<tc>, window_params = [{transform_indices = @transform_0, window_bounds = array<i64: 8, 32>}, {transform_indices = @transform_1, window_bounds = array<i64: 8, 1>}, {transform_indices = @transform_2, window_bounds = array<i64: 1, 1, 128>}]} {
    %c0_i32 = arith.constant 0 : i32
    %0 = arith.cmpi eq, %arg1, %c0_i32 : i32
    %1 = arith.extui %0 : i1 to i32
    %c0_i32_0 = arith.constant 0 : i32
    %2 = arith.cmpi ne, %1, %c0_i32_0 : i32
    scf.if %2 {
      %cst_23 = arith.constant -1.000000e+30 : f32
      %38 = vector.broadcast %cst_23 : f32 to vector<8x1xf32>
      %c0_24 = arith.constant 0 : index
      %c0_25 = arith.constant 0 : index
      %39 = vector.load %arg5[%c0_24, %c0_25] : memref<8x1xf32, #tpu.memory_space<vmem>>, vector<8x1xf32>
      tpu.vector_store %arg5[%c0_24, %c0_25], %38 {strides = array<i32>} : memref<8x1xf32, #tpu.memory_space<vmem>>, vector<8x1xf32>,
      %cst_26 = arith.constant 0.000000e+00 : f32
      %40 = vector.broadcast %cst_26 : f32 to vector<8x1xf32>
      %c0_27 = arith.constant 0 : index
      %c0_28 = arith.constant 0 : index
      %41 = vector.load %arg6[%c0_27, %c0_28] : memref<8x1xf32, #tpu.memory_space<vmem>>, vector<8x1xf32>
      tpu.vector_store %arg6[%c0_27, %c0_28], %40 {strides = array<i32>} : memref<8x1xf32, #tpu.memory_space<vmem>>, vector<8x1xf32>,
      %cst_29 = arith.constant 0.000000e+00 : f32
      %42 = vector.broadcast %cst_29 : f32 to vector<8x1xf32>
      %c0_30 = arith.constant 0 : index
      %c0_31 = arith.constant 0 : index
      %43 = vector.load %arg7[%c0_30, %c0_31] : memref<8x1xf32, #tpu.memory_space<vmem>>, vector<8x1xf32>
      tpu.vector_store %arg7[%c0_30, %c0_31], %42 {strides = array<i32>} : memref<8x1xf32, #tpu.memory_space<vmem>>, vector<8x1xf32>,
    } else {
    }
    %c0 = arith.constant 0 : index
    %c0_1 = arith.constant 0 : index
    %3 = vector.load %arg2[%c0, %c0_1] : memref<8x32xf32, #tpu.memory_space<vmem>>, vector<8x32xf32>
    %c0_2 = arith.constant 0 : index
    %c0_3 = arith.constant 0 : index
    %4 = vector.load %arg3[%c0_2, %c0_3] : memref<8x1xi32, #tpu.memory_space<vmem>>, vector<8x1xi32>
    %5 = tpu.iota {dimensions = array<i32: 1>} : vector<8x32xi32>
    %c32_i32 = arith.constant 32 : i32
    %6 = arith.muli %arg1, %c32_i32 : i32
    %c0_4 = arith.constant 0 : index
    %c0_5 = arith.constant 0 : index
    %7 = vector.load %arg5[%c0_4, %c0_5] : memref<8x1xf32, #tpu.memory_space<vmem>>, vector<8x1xf32>
    %cst = arith.constant dense<0xFF800000> : vector<8xf32>
    %8 = vector.multi_reduction <maximumf>, %3, %cst [1] : vector<8x32xf32> to vector<8xf32>
    %9 = vector.shape_cast %8 : vector<8xf32> to vector<8x1xf32>
    %10 = arith.maximumf %7, %9 : vector<8x1xf32>
    %c0_6 = arith.constant 0 : index
    %c0_7 = arith.constant 0 : index
    %11 = vector.load %arg5[%c0_6, %c0_7] : memref<8x1xf32, #tpu.memory_space<vmem>>, vector<8x1xf32>
    %12 = arith.subf %11, %10 : vector<8x1xf32>
    %13 = math.exp %12 : vector<8x1xf32>
    %14 = vector.broadcast %10 : vector<8x1xf32> to vector<8x32xf32>
    %15 = arith.subf %3, %14 : vector<8x32xf32>
    %16 = math.exp %15 : vector<8x32xf32>
    %c0_8 = arith.constant 0 : index
    %c0_9 = arith.constant 0 : index
    %17 = vector.load %arg6[%c0_8, %c0_9] : memref<8x1xf32, #tpu.memory_space<vmem>>, vector<8x1xf32>
    %18 = arith.mulf %13, %17 : vector<8x1xf32>
    %cst_10 = arith.constant dense<0.000000e+00> : vector<8xf32>
    %19 = vector.multi_reduction <add>, %16, %cst_10 [1] : vector<8x32xf32> to vector<8xf32>
    %20 = vector.shape_cast %19 : vector<8xf32> to vector<8x1xf32>
    %21 = arith.addf %18, %20 : vector<8x1xf32>
    %c0_11 = arith.constant 0 : index
    %c0_12 = arith.constant 0 : index
    %22 = vector.load %arg6[%c0_11, %c0_12] : memref<8x1xf32, #tpu.memory_space<vmem>>, vector<8x1xf32>
    tpu.vector_store %arg6[%c0_11, %c0_12], %21 {strides = array<i32>} : memref<8x1xf32, #tpu.memory_space<vmem>>, vector<8x1xf32>,
    %c0_13 = arith.constant 0 : index
    %c0_14 = arith.constant 0 : index
    %23 = vector.load %arg7[%c0_13, %c0_14] : memref<8x1xf32, #tpu.memory_space<vmem>>, vector<8x1xf32>
    %24 = vector.broadcast %6 : i32 to vector<8x1xi32>
    %25 = arith.subi %4, %24 : vector<8x1xi32>
    %26 = vector.broadcast %25 : vector<8x1xi32> to vector<8x32xi32>
    %27 = arith.cmpi eq, %5, %26 : vector<8x32xi32>
    %cst_15 = arith.constant 0.000000e+00 : f32
    %28 = vector.broadcast %cst_15 : f32 to vector<8x32xf32>
    %29 = arith.select %27, %3, %28 : vector<8x32xi1>, vector<8x32xf32>
    %cst_16 = arith.constant dense<0.000000e+00> : vector<8xf32>
    %30 = vector.multi_reduction <add>, %29, %cst_16 [1] : vector<8x32xf32> to vector<8xf32>
    %31 = vector.shape_cast %30 : vector<8xf32> to vector<8x1xf32>
    %32 = arith.addf %23, %31 : vector<8x1xf32>
    %c0_17 = arith.constant 0 : index
    %c0_18 = arith.constant 0 : index
    %33 = vector.load %arg7[%c0_17, %c0_18] : memref<8x1xf32, #tpu.memory_space<vmem>>, vector<8x1xf32>
    tpu.vector_store %arg7[%c0_17, %c0_18], %32 {strides = array<i32>} : memref<8x1xf32, #tpu.memory_space<vmem>>, vector<8x1xf32>,
    %c0_19 = arith.constant 0 : index
    %c0_20 = arith.constant 0 : index
    %34 = vector.load %arg5[%c0_19, %c0_20] : memref<8x1xf32, #tpu.memory_space<vmem>>, vector<8x1xf32>
    tpu.vector_store %arg5[%c0_19, %c0_20], %10 {strides = array<i32>} : memref<8x1xf32, #tpu.memory_space<vmem>>, vector<8x1xf32>,
    %c0_i32_21 = arith.constant 0 : i32
    %35 = arith.cmpi eq, %arg1, %c0_i32_21 : i32
    %36 = arith.extui %35 : i1 to i32
    %c0_i32_22 = arith.constant 0 : i32
    %37 = arith.cmpi ne, %36, %c0_i32_22 : i32
    scf.if %37 {
      %c0_23 = arith.constant 0 : index
      %c0_24 = arith.constant 0 : index
      %38 = vector.load %arg5[%c0_23, %c0_24] : memref<8x1xf32, #tpu.memory_space<vmem>>, vector<8x1xf32>
      %c0_25 = arith.constant 0 : index
      %c0_26 = arith.constant 0 : index
      %39 = vector.load %arg6[%c0_25, %c0_26] : memref<8x1xf32, #tpu.memory_space<vmem>>, vector<8x1xf32>
      %40 = math.log %39 : vector<8x1xf32>
      %41 = arith.addf %38, %40 : vector<8x1xf32>
      %c0_27 = arith.constant 0 : index
      %c0_28 = arith.constant 0 : index
      %42 = vector.load %arg7[%c0_27, %c0_28] : memref<8x1xf32, #tpu.memory_space<vmem>>, vector<8x1xf32>
      %43 = arith.subf %41, %42 : vector<8x1xf32>
      %cst_29 = arith.constant dense<0.000000e+00> : vector<1xf32>
      %44 = vector.multi_reduction <add>, %43, %cst_29 [0] : vector<8x1xf32> to vector<1xf32>
      %45 = vector.shape_cast %44 : vector<1xf32> to vector<1x1xf32>
      %46 = vector.shape_cast %45 : vector<1x1xf32> to vector<1x1x1xf32>
      %47 = vector.shape_cast %46 : vector<1x1x1xf32> to vector<1x1x1xf32>
      %48 = vector.broadcast %47 : vector<1x1x1xf32> to vector<1x1x128xf32>
      %c0_30 = arith.constant 0 : index
      %c0_31 = arith.constant 0 : index
      %c0_32 = arith.constant 0 : index
      %49 = vector.load %arg4[%c0_30, %c0_31, %c0_32] : memref<1x1x128xf32, #tpu.memory_space<vmem>>, vector<1x1x128xf32>
      tpu.vector_store %arg4[%c0_30, %c0_31, %c0_32], %48 {strides = array<i32>} : memref<1x1x128xf32, #tpu.memory_space<vmem>>, vector<1x1x128xf32>,
    } else {
    }
    return
  }
  func.func @transform_0(%arg0: i32, %arg1: i32) -> (i32, i32) {
    %c0_i32 = arith.constant 0 : i32
    return %arg0, %arg1 : i32, i32
  }
  func.func @transform_1(%arg0: i32, %arg1: i32) -> (i32, i32) {
    %c0_i32 = arith.constant 0 : i32
    %c0_i32_0 = arith.constant 0 : i32
    return %arg0, %c0_i32 : i32, i32
  }
  func.func @transform_2(%arg0: i32, %arg1: i32) -> (i32, i32, i32) {
    %c0_i32 = arith.constant 0 : i32
    %c0_i32_0 = arith.constant 0 : i32
    %c0_i32_1 = arith.constant 0 : i32
    return %arg0, %c0_i32, %c0_i32_0 : i32, i32, i32
  }
}

</mosaic_0001>

<bundles_post_ra>
// kernel: cross_entropy_loss.1
= control target key start
LH: loop header
LB: loop body
LE: loop exit
PB: predicated region body
PF: predicated region fallthrough
CT: control target
= control target key end

     0   :  { %vm25_vm0 = vcmask 261120   ;;  %vm15_vm1 = vcmask 7168   ;;  %v101_v1 = vmov -1e+30   ;;  %v102_v3 = vmov 0   ;;  %s138_s0 = inlined_call_operand.vmem [shape: f32[8,32], index: 0, kind: input, shape index: {}]   ;;  %s139_s1 = inlined_call_operand.vmem [shape: s32[8,1], index: 1, kind: input, shape index: {}]   ;;  %s140_s2 = inlined_call_operand.vmem [shape: f32[1,1,128], index: 2, kind: output, shape index: {}]  }
   0x1   :  { %v19_v0 = vld [vmem:[%s138_s0] sm:$0xff]  ;;  %16 = vst.msk [vmem:[#allocation2] sm:$0xff] %vm15_vm1, %v101_v1  ;;  %93 = vset.pattern.permute.xlu0 %v102_v3  ;;  %94 = vset.pattern.permute.xlu1 %v102_v3  ;;  %v103_v5 = vmov 0.0   ;;  %v21_v13 = vlaneseq }
   0x2   :  { %v26_v2 = vsel %vm25_vm0, %v19_v0, -inf  ;;  %v20_v4 = vld [vmem:[%s139_s1] sm:$0xff]  ;;  %17 = vst.msk [vmem:[#allocation3] sm:$0xff] %vm15_vm1, %v103_v5  ;;  %18 = vst.msk [vmem:[#allocation4] sm:$0xff] %vm15_vm1, %v103_v5 }
   0x3   :  { %27 = vmax.xlane.f32.xlu0 %v26_v2  ;;  %53 = vperm.xlu1 %94, %v20_v4   ;;  %v22_v14 = vand.u32 127, %v21_v13 }
   0x8   :  { %v24_v6 = vld [vmem:[#allocation2] sm:$0xff] }
   0x9   :  { %v41_v22 = vld [vmem:[#allocation3] sm:$0xff]  ;;  %v49_v26 = vld [vmem:[#allocation4] sm:$0xff] }
  0x82   :  { %v54_v15 = vpop.permute.xlu1 %53 }
  0x83   :  { %vm55_vm2 = vcmp.eq.s32.totalorder %v22_v14, %v54_v15 }
  0x84   :  { %v56_v17 = vsel %vm55_vm2, %v19_v0, 0.0 }
  0x85   :  { %v57_v19 = vsel %vm25_vm0, %v56_v17, 0.0 }
  0x90   :  { %v28_v7 = vpop.xlane.xlu0 %27 }
  0x91   :  { %v29_v8 = vmax.f32 %v24_v6, %v28_v7 }
  0x93   :  { %v30_v9 = vsub.f32 %v24_v6, %v29_v8  ;;  %62 = vst.msk [vmem:[#allocation2] sm:$0xff] %vm15_vm1, %v29_v8  ;;  %35 = vperm.xlu0 %93, %v29_v8  }
  0x95   :  { %v31_v20 = vmul.f32 1.442695, %v30_v9 }
  0x9a   :  { %v66_v32 = vld [vmem:[#allocation2] sm:$0xff] }
 0x112   :  { %v36_v10 = vpop.permute.xlu0 %35 }
 0x113   :  { %v38_v11 = vsub.f32 %v19_v0, %v36_v10 }
 0x115   :  { %v39_v12 = vmul.f32 1.442695, %v38_v11 }
 0x117   :  { %95 = vpow2.f32 %v39_v12 }
 0x118   :  { %97 = vpow2.f32 %v31_v20 }
 0x121   :  { %v96_v16 = vpop.eup %95 }
 0x122   :  { %v43_v18 = vsel %vm25_vm0, %v96_v16, 0.0  ;;  %v98_v21 = vpop.eup %97 }
 0x123   :  { %44 = vadd.xlane.f32.xlu1 %v43_v18  ;;  %v42_v23 = vmul.f32 %v98_v21, %v41_v22 }
 0x127   :  { %58 = vadd.xlane.f32.xlu1 %v57_v19 }
 0x1b0   :  { %v45_v24 = vpop.xlane.xlu1 %44 }
 0x1b1   :  { %v46_v25 = vadd.f32 %v45_v24, %v42_v23 }
 0x1b3   :  { %48 = vst.msk [vmem:[#allocation3] sm:$0xff] %vm15_vm1, %v46_v25 }
 0x1b4   :  { %v59_v27 = vpop.xlane.xlu1 %58 }
 0x1b5   :  { %v60_v28 = vadd.f32 %v59_v27, %v49_v26 }
 0x1b7   :  { %61 = vst.msk [vmem:[#allocation4] sm:$0xff] %vm15_vm1, %v60_v28 }
 0x1ba   :  { %v67_v29 = vld [vmem:[#allocation3] sm:$0xff] }
 0x1bb   :  { %99 = vlog2.f32 %v67_v29 }
 0x1be   :  { %v71_v33 = vld [vmem:[#allocation4] sm:$0xff] }
 0x1c5   :  { %v100_v30 = vpop.eup %99 }
 0x1c6   :  { %v69_v31 = vmul.f32 0.6931472, %v100_v30 }
 0x1c8   :  { %v70_v34 = vadd.f32 %v69_v31, %v66_v32 }
 0x1ca   :  { %v72_v35 = vsub.f32 %v70_v34, %v71_v33 }
 0x1cc   :  { %v73_v36 = vsel %vm15_vm1, %v72_v35, 0.0 }
 0x1cd   :  { %v74_v37 = vrot.slane %v73_v36, 4 }
 0x1cf   :  { %v75_v38 = vadd.f32 %v74_v37, %v73_v36 }
 0x1d1   :  { %v76_v39 = vrot.slane %v75_v38, 2 }
 0x1d3   :  { %v77_v40 = vadd.f32 %v76_v39, %v75_v38 }
 0x1d5   :  { %v78_v41 = vrot.slane %v77_v40, 1 }
 0x1d7   :  { %v79_v42 = vadd.f32 %v78_v41, %v77_v40 }
 0x1d9   :  { %82 = vperm.xlu1 %94, %v79_v42  }
 0x258   :  { %v83_v43 = vpop.permute.xlu1 %82 }
 0x259   :  { %85 = vst [vmem:[%s140_s2] sm:$0x1] %v83_v43 }

</bundles_post_ra>
